<compile_context>
chip_gen: v7x
topology: tpu7x:2x2x1
jax: 0.10.0
libtpu: 0.0.40
codegen_flags: <defaults>
</compile_context>

<pallas_src>
import functools

import jax
import jax.numpy as jnp
from jax.experimental import pallas as pl
from jax.experimental.pallas import tpu as pltpu


# Large finite (NOT inf, to avoid inf*0 -> NaN in the Newton step / denom sum):
# padded cluster columns get csq' = 1e30, so their numerator is ~1e-30 and they
# vanish from the row-wise normalization.
_PAD_DIST = 1e30


def _round_up(x: int, m: int) -> int:
    return ((x + m - 1) // m) * m


def _cdiv(a: int, b: int) -> int:
    return (a + b - 1) // b


def _sublane(dtype) -> int:
    n = jnp.dtype(dtype).itemsize
    return 8 if n >= 4 else (16 if n == 2 else 32)


def _physical_vmem_bytes() -> int:
    """Per-generation VMEM capacity (v5e/v6e: 128 MiB, v7x: 64 MiB per TC)."""
    try:
        return int(pltpu.get_tpu_info().vmem_capacity_bytes)
    except Exception:
        return 64 * 1024 * 1024  # conservative default (v7x per-core)


# ---------------------------------------------------------------------------
# Kernel bodies
# ---------------------------------------------------------------------------

def _recip(x):
    # EUP vrcp (approx=True actually lands on the EUP slot) + one Newton-Raphson
    # step for ~f32 accuracy; keeps the divide chain off the VALU.
    y = pl.reciprocal(x, approx=True)
    return y * (2.0 - x * y)


def _finalize(xc, x_sq, c_sq, o_ref, power: float):
    # t = 1 + ||x - c||^2 / alpha, built from pre-folded operands.
    # Clamp at 1.0 absorbs the tiny negative cancellation at d^2 ~ 0.
    t = jnp.maximum(x_sq + c_sq - xc, 1.0)
    num = _recip(t)
    if power != 1.0:                         # alpha == 1 -> power == 1 -> skip entirely
        if float(power).is_integer():
            p = int(power)
            acc = num
            for _ in range(p - 1):
                acc = acc * num              # cheap repeated multiply
            num = acc
        else:
            num = num ** power               # general case (EUP exp/log)
    denom = jnp.sum(num, axis=1, keepdims=True)
    o_ref[...] = (num * _recip(denom)).astype(o_ref.dtype)


def _assign_kernel(x_ref, ct_ref, csq_ref, o_ref, *, inv_alpha: float, power: float):
    # x_ref:   [TB, D]       batch tile (input dtype feeds the MXU directly)
    # ct_ref:  [D, K_pad]    (2/alpha) * centers^T, resident across the grid
    # csq_ref: [1, K_pad]    1 + ||c||^2/alpha (padded cols = 1e30), f32
    # o_ref:   [TB, K_pad]   lane-dense soft assignments for this tile
    x = x_ref[...]
    xc = jnp.dot(x, ct_ref[...], preferred_element_type=jnp.float32)     # MXU, f32 acc
    # NOTE(v5e): the f32 cast of the tile should fuse per-vreg; if profiling shows a
    # materialized [TB, D] f32 temp, compute the row norm in sublane-sized chunks.
    xf = x.astype(jnp.float32)
    x_sq = jnp.sum(xf * xf, axis=-1, keepdims=True) * inv_alpha           # [TB, 1]
    _finalize(xc, x_sq, csq_ref[...], o_ref, power)


def _assign_kernel_dtiled(x_ref, ct_ref, csq_ref, o_ref, acc_ref, xsq_ref,
                          *, inv_alpha: float, power: float):
    # Contraction-streamed variant: grid = (batch tiles, D tiles).
    # acc_ref: [TB, K_pad] f32 accumulates (2/alpha) x.c ; xsq_ref: [TB, 1] accumulates ||x||^2/alpha.
    d = pl.program_id(1)

    @pl.when(d == 0)
    def _():
        acc_ref[...] = jnp.zeros_like(acc_ref)
        xsq_ref[...] = jnp.zeros_like(xsq_ref)

    x = x_ref[...]
    acc_ref[...] += jnp.dot(x, ct_ref[...], preferred_element_type=jnp.float32)
    xf = x.astype(jnp.float32)
    xsq_ref[...] += jnp.sum(xf * xf, axis=-1, keepdims=True) * inv_alpha

    @pl.when(d == pl.num_programs(1) - 1)
    def _():
        _finalize(acc_ref[...], xsq_ref[...], csq_ref[...], o_ref, power)


# ---------------------------------------------------------------------------
# VMEM footprint models (count buffer multiplicity + f32 temporaries explicitly)
# ---------------------------------------------------------------------------

def _fp_resident(tb, D, K_pad, in_item, out_item, ct_bufs=2):
    x = 2 * tb * D * in_item                         # double-buffered batch tile
    o = 2 * tb * K_pad * out_item                    # double-buffered output tile
    ct = ct_bufs * (D * K_pad * in_item + K_pad * 4)  # resident centers^T + csq'
    tmp = tb * D * 4 + 2 * tb * K_pad * 4            # f32 cast + xc/numerator temps
    return x + o + ct + tmp


def _fp_dtiled(tb, td, K_pad, in_item, out_item):
    x = 2 * tb * td * in_item
    ct = 2 * td * K_pad * in_item + 2 * K_pad * 4
    o = 2 * tb * K_pad * out_item
    scr = tb * K_pad * 4 + tb * 4                    # accumulators in scratch
    tmp = tb * td * 4 + 2 * tb * K_pad * 4
    return x + ct + o + scr + tmp


# ---------------------------------------------------------------------------
# Wrapper
# ---------------------------------------------------------------------------

def cluster_assignment(batch: jax.Array, cluster_centers: jax.Array,
                       alpha: float = 1.0, *,
                       tile_b: int | None = None,
                       tile_d: int | None = None,
                       out_dtype=None) -> jax.Array:
    """Soft cluster assignment: batch [B, D], centers [K, D] -> [B, K].

    Output dtype defaults to the batch dtype (halves writeback for bf16 inputs);
    pass out_dtype=jnp.float32 to force f32.
    """
    B, D = batch.shape
    K, Dc = cluster_centers.shape
    assert D == Dc, "embedding dimension mismatch"

    out_dtype = jnp.dtype(out_dtype) if out_dtype is not None else jnp.dtype(batch.dtype)
    in_item = jnp.dtype(batch.dtype).itemsize
    out_item = out_dtype.itemsize
    sub = max(_sublane(batch.dtype), _sublane(out_dtype))

    # Lane-dense output: pad cluster axis to a multiple of 128.
    K_pad = max(128, _round_up(K, 128))

    # --- per-generation VMEM budget + matching compiler limit ---
    phys = _physical_vmem_bytes()
    vmem_limit = min(int(phys * 3 // 4), 100 * 1024 * 1024)
    budget = int(vmem_limit * 0.85)          # headroom for compiler-managed temps

    # --- batch tile ---
    if tile_b is None:
        tb = min(1024, _round_up(B, sub))
        # Guarantee >=2 grid steps (pipelining + v7x dual-TC sharding); prefer >=4
        # steps as long as the tile stays reasonably large.
        for parts in (4, 2):
            cand = max(_round_up(_cdiv(B, parts), sub), sub)
            if cand >= 256 or parts == 2:
                tb = min(tb, cand)
                break
        # Shrink for VMEM, but not below ~512 rows before switching to D-tiling
        # (throughput drops sharply below ~512-row tiles).
        floor = min(tb, max(512, sub))
        while tb > floor and _fp_resident(tb, D, K_pad, in_item, out_item) > budget:
            tb = max(_round_up(tb // 2, sub), sub)
    else:
        tb = max(_round_up(tile_b, sub), sub)

    use_dtiled = (tile_d is not None) or (
        _fp_resident(tb, D, K_pad, in_item, out_item) > budget)

    td = None
    if use_dtiled:
        td = _round_up(tile_d, 128) if tile_d is not None else _round_up(D, 128)
        while td > 128 and _fp_dtiled(tb, td, K_pad, in_item, out_item) > budget:
            td = _round_up(td // 2, 128)
        while tb > sub and _fp_dtiled(tb, td, K_pad, in_item, out_item) > budget:
            tb = max(_round_up(tb // 2, sub), sub)

    # --- pad batch rows to a tile multiple (padded rows are harmless: x=0 -> t>=1) ---
    B_pad = _round_up(B, tb)
    x = batch
    if B_pad != B:
        x = jnp.pad(x, ((0, B_pad - B), (0, 0)))

    inv_alpha = 1.0 / float(alpha)
    power = (float(alpha) + 1.0) / 2.0

    # --- pre-folded operands (computed once, tiny HBM cost) ---
    #   ct'  = (2/alpha) * C^T                 [D, K_pad]  (padded cols = 0)
    #   csq' = 1 + ||c||^2 / alpha             [1, K_pad]  (padded cols = 1e30)
    c_f32 = cluster_centers.astype(jnp.float32)
    c_sq = jnp.sum(c_f32 * c_f32, axis=1) * inv_alpha + 1.0
    c_sq = jnp.pad(c_sq, (0, K_pad - K), constant_values=_PAD_DIST).reshape(1, K_pad)
    c_t = jnp.transpose(jnp.pad(c_f32 * (2.0 * inv_alpha), ((0, K_pad - K), (0, 0))))
    c_t = c_t.astype(batch.dtype)                                   # [D, K_pad], MXU-ready

    D_pad = D
    if use_dtiled:
        D_pad = _round_up(D, td)
        if D_pad != D:
            x = jnp.pad(x, ((0, 0), (0, D_pad - D)))
            c_t = jnp.pad(c_t, ((0, D_pad - D), (0, 0)))

    def compiler_params(dims):
        return pltpu.CompilerParams(dimension_semantics=dims,
                                    vmem_limit_bytes=vmem_limit)

    if not use_dtiled:
        kernel = functools.partial(_assign_kernel, inv_alpha=inv_alpha, power=power)

        def call(single_buffer_resident: bool):
            # Grid-invariant inputs: single-buffer to halve their resident footprint.
            extra = {"pipeline_mode": pl.Buffered(1)} if single_buffer_resident else {}
            return pl.pallas_call(
                kernel,
                out_shape=jax.ShapeDtypeStruct((B_pad, K_pad), out_dtype),
                grid_spec=pltpu.PrefetchScalarGridSpec(
                    num_scalar_prefetch=0,
                    grid=(B_pad // tb,),
                    in_specs=[
                        pl.BlockSpec((tb, D), lambda i: (i, 0)),          # pipelined batch tile
                        pl.BlockSpec((D, K_pad), lambda i: (0, 0), **extra),  # resident centers^T
                        pl.BlockSpec((1, K_pad), lambda i: (0, 0), **extra),  # resident csq'
                    ],
                    out_specs=pl.BlockSpec((tb, K_pad), lambda i: (i, 0)),
                ),
                compiler_params=compiler_params(("parallel",)),
            )(x, c_t, c_sq)

        try:
            out = call(True)
        except Exception:
            # Fallback if this Pallas build rejects pipeline_mode on these specs.
            out = call(False)
    else:
        kernel = functools.partial(_assign_kernel_dtiled, inv_alpha=inv_alpha, power=power)
        out = pl.pallas_call(
            kernel,
            out_shape=jax.ShapeDtypeStruct((B_pad, K_pad), out_dtype),
            grid_spec=pltpu.PrefetchScalarGridSpec(
                num_scalar_prefetch=0,
                grid=(B_pad // tb, D_pad // td),
                in_specs=[
                    pl.BlockSpec((tb, td), lambda i, d: (i, d)),
                    pl.BlockSpec((td, K_pad), lambda i, d: (d, 0)),
                    pl.BlockSpec((1, K_pad), lambda i, d: (0, 0)),
                ],
                out_specs=pl.BlockSpec((tb, K_pad), lambda i, d: (i, 0)),
                scratch_shapes=[
                    pltpu.VMEM((tb, K_pad), jnp.float32),   # (2/alpha) x.c accumulator
                    pltpu.VMEM((tb, 1), jnp.float32),       # ||x||^2/alpha accumulator
                ],
            ),
            compiler_params=compiler_params(("parallel", "arbitrary")),
        )(x, c_t, c_sq)

    return out[:B, :K]


def xavier_uniform(key, shape, dtype=jnp.float32):
    # nn.init.xavier_uniform_ for a 2D (K, D) tensor: fan_out=K, fan_in=D.
    fan_out, fan_in = shape
    bound = (6.0 / (fan_in + fan_out)) ** 0.5
    return jax.random.uniform(key, shape, dtype=dtype, minval=-bound, maxval=bound)


if __name__ == "__main__":
    def reference(b, c, a):
        norm_sq = jnp.sum((b[:, None, :].astype(jnp.float32)
                           - c[None, :, :].astype(jnp.float32)) ** 2, axis=2)
        num = (1.0 / (1.0 + norm_sq / a)) ** (float(a + 1.0) / 2.0)
        return num / jnp.sum(num, axis=1, keepdims=True)

    key = jax.random.PRNGKey(0)
    k1, k2, k3, k4 = jax.random.split(key, 4)

    # --- Test 1: resident-centers fast path (default DEC config, alpha = 1) ---
    B, D, K = 8, 32, 4
    alpha = 1.0
    batch = jax.random.normal(k1, (B, D), dtype=jnp.float32)
    centers = xavier_uniform(k2, (K, D))
    out = jax.block_until_ready(cluster_assignment(batch, centers, alpha=alpha))
    ref = reference(batch, centers, alpha)
    assert out.shape == (B, K)
    assert jnp.allclose(out, ref, atol=1e-5, rtol=1e-4), "resident path mismatch vs reference"

    # --- Test 2: D-tiled (contraction-streamed) path, multi-tile batch, integer power ---
    B2, D2, K2 = 16, 256, 6
    alpha2 = 3.0                       # power = 2 -> repeated-multiply branch
    batch2 = jax.random.normal(k3, (B2, D2), dtype=jnp.float32)
    centers2 = xavier_uniform(k4, (K2, D2))
    out2 = jax.block_until_ready(
        cluster_assignment(batch2, centers2, alpha=alpha2, tile_d=128))
    ref2 = reference(batch2, centers2, alpha2)
    assert out2.shape == (B2, K2)
    assert jnp.allclose(out2, ref2, atol=1e-5, rtol=1e-4), "D-tiled path mismatch vs reference"

    print("KERNEL_OK")
</pallas_src>

<mosaic_0001>
module attributes {stable_mosaic.version = 11 : i64} {
  func.func @_assign_kernel(%arg0: i32, %arg1: memref<8x32xf32, #tpu.memory_space<vmem>>, %arg2: memref<32x128xf32, #tpu.memory_space<vmem>>, %arg3: memref<1x128xf32, #tpu.memory_space<vmem>>, %arg4: memref<8x128xf32, #tpu.memory_space<vmem>>) attributes {dimension_semantics = [#tpu.dimension_semantics<parallel>], iteration_bounds = array<i64: 1>, scalar_prefetch = 0 : i64, scratch_operands = 0 : i64, tpu.core_type = #tpu.core_type<tc>, window_params = [{transform_indices = @transform_0, window_bounds = array<i64: 8, 32>}, {pipeline_mode = #tpu.pipeline_mode<synchronous>, transform_indices = @transform_1, window_bounds = array<i64: 32, 128>}, {pipeline_mode = #tpu.pipeline_mode<synchronous>, transform_indices = @transform_2, window_bounds = array<i64: 1, 128>}, {transform_indices = @transform_3, window_bounds = array<i64: 8, 128>}]} {
    %c0 = arith.constant 0 : index
    %c0_0 = arith.constant 0 : index
    %0 = vector.load %arg1[%c0, %c0_0] : memref<8x32xf32, #tpu.memory_space<vmem>>, vector<8x32xf32>
    %c0_1 = arith.constant 0 : index
    %c0_2 = arith.constant 0 : index
    %1 = vector.load %arg2[%c0_1, %c0_2] : memref<32x128xf32, #tpu.memory_space<vmem>>, vector<32x128xf32>
    %cst = arith.constant dense<0.000000e+00> : vector<8x128xf32>
    %2 = tpu.matmul %0, %1, %cst {dimension_numbers = #tpu.dot_dimension_numbers<[1], [0], [0], [1], [0, 0, 1, 1], [], []>} : vector<8x32xf32>, vector<32x128xf32>, vector<8x128xf32> -> vector<8x128xf32>
    %3 = arith.mulf %0, %0 : vector<8x32xf32>
    %cst_3 = arith.constant dense<0.000000e+00> : vector<8xf32>
    %4 = vector.multi_reduction <add>, %3, %cst_3 [1] : vector<8x32xf32> to vector<8xf32>
    %5 = vector.shape_cast %4 : vector<8xf32> to vector<8x1xf32>
    %cst_4 = arith.constant 1.000000e+00 : f32
    %6 = vector.broadcast %cst_4 : f32 to vector<8x1xf32>
    %7 = arith.mulf %5, %6 : vector<8x1xf32>
    %c0_5 = arith.constant 0 : index
    %c0_6 = arith.constant 0 : index
    %8 = vector.load %arg3[%c0_5, %c0_6] : memref<1x128xf32, #tpu.memory_space<vmem>>, vector<1x128xf32>
    %9 = vector.broadcast %7 : vector<8x1xf32> to vector<8x128xf32>
    %10 = vector.broadcast %8 : vector<1x128xf32> to vector<8x128xf32>
    %11 = arith.addf %9, %10 : vector<8x128xf32>
    %12 = arith.subf %11, %2 : vector<8x128xf32>
    %cst_7 = arith.constant 1.000000e+00 : f32
    %13 = vector.broadcast %cst_7 : f32 to vector<8x128xf32>
    %14 = arith.maximumf %12, %13 : vector<8x128xf32>
    %15 = tpu.reciprocal %14 {approx = true} : vector<8x128xf32> -> vector<8x128xf32>
    %16 = arith.mulf %14, %15 : vector<8x128xf32>
    %cst_8 = arith.constant 2.000000e+00 : f32
    %17 = vector.broadcast %cst_8 : f32 to vector<8x128xf32>
    %18 = arith.subf %17, %16 : vector<8x128xf32>
    %19 = arith.mulf %15, %18 : vector<8x128xf32>
    %cst_9 = arith.constant dense<0.000000e+00> : vector<8xf32>
    %20 = vector.multi_reduction <add>, %19, %cst_9 [1] : vector<8x128xf32> to vector<8xf32>
    %21 = vector.shape_cast %20 : vector<8xf32> to vector<8x1xf32>
    %22 = tpu.reciprocal %21 {approx = true} : vector<8x1xf32> -> vector<8x1xf32>
    %23 = arith.mulf %21, %22 : vector<8x1xf32>
    %cst_10 = arith.constant 2.000000e+00 : f32
    %24 = vector.broadcast %cst_10 : f32 to vector<8x1xf32>
    %25 = arith.subf %24, %23 : vector<8x1xf32>
    %26 = arith.mulf %22, %25 : vector<8x1xf32>
    %27 = vector.broadcast %26 : vector<8x1xf32> to vector<8x128xf32>
    %28 = arith.mulf %19, %27 : vector<8x128xf32>
    %c0_11 = arith.constant 0 : index
    %c0_12 = arith.constant 0 : index
    %29 = vector.load %arg4[%c0_11, %c0_12] : memref<8x128xf32, #tpu.memory_space<vmem>>, vector<8x128xf32>
    tpu.vector_store %arg4[%c0_11, %c0_12], %28 {strides = array<i32>} : memref<8x128xf32, #tpu.memory_space<vmem>>, vector<8x128xf32>,
    return
  }
  func.func @transform_0(%arg0: i32) -> (i32, i32) {
    %c0_i32 = arith.constant 0 : i32
    %c0_i32_0 = arith.constant 0 : i32
    return %arg0, %c0_i32 : i32, i32
  }
  func.func @transform_1(%arg0: i32) -> (i32, i32) {
    %c0_i32 = arith.constant 0 : i32
    %c0_i32_0 = arith.constant 0 : i32
    %c0_i32_1 = arith.constant 0 : i32
    return %c0_i32, %c0_i32_0 : i32, i32
  }
  func.func @transform_2(%arg0: i32) -> (i32, i32) {
    %c0_i32 = arith.constant 0 : i32
    %c0_i32_0 = arith.constant 0 : i32
    %c0_i32_1 = arith.constant 0 : i32
    return %c0_i32, %c0_i32_0 : i32, i32
  }
  func.func @transform_3(%arg0: i32) -> (i32, i32) {
    %c0_i32 = arith.constant 0 : i32
    %c0_i32_0 = arith.constant 0 : i32
    return %arg0, %c0_i32 : i32, i32
  }
}

module attributes {stable_mosaic.version = 11 : i64} {
  func.func @_assign_kernel(%arg0: i32, %arg1: memref<8x32xf32, #tpu.memory_space<vmem>>, %arg2: memref<32x128xf32, #tpu.memory_space<vmem>>, %arg3: memref<1x128xf32, #tpu.memory_space<vmem>>, %arg4: memref<8x128xf32, #tpu.memory_space<vmem>>) attributes {dimension_semantics = [#tpu.dimension_semantics<parallel>], iteration_bounds = array<i64: 1>, scalar_prefetch = 0 : i64, scratch_operands = 0 : i64, tpu.core_type = #tpu.core_type<tc>, window_params = [{transform_indices = @transform_0, window_bounds = array<i64: 8, 32>}, {pipeline_mode = #tpu.pipeline_mode<synchronous>, transform_indices = @transform_1, window_bounds = array<i64: 32, 128>}, {pipeline_mode = #tpu.pipeline_mode<synchronous>, transform_indices = @transform_2, window_bounds = array<i64: 1, 128>}, {transform_indices = @transform_3, window_bounds = array<i64: 8, 128>}]} {
    %c0 = arith.constant 0 : index
    %c0_0 = arith.constant 0 : index
    %0 = vector.load %arg1[%c0, %c0_0] : memref<8x32xf32, #tpu.memory_space<vmem>>, vector<8x32xf32>
    %c0_1 = arith.constant 0 : index
    %c0_2 = arith.constant 0 : index
    %1 = vector.load %arg2[%c0_1, %c0_2] : memref<32x128xf32, #tpu.memory_space<vmem>>, vector<32x128xf32>
    %cst = arith.constant dense<0.000000e+00> : vector<8x128xf32>
    %2 = tpu.matmul %0, %1, %cst {dimension_numbers = #tpu.dot_dimension_numbers<[1], [0], [0], [1], [0, 0, 1, 1], [], []>} : vector<8x32xf32>, vector<32x128xf32>, vector<8x128xf32> -> vector<8x128xf32>
    %3 = arith.mulf %0, %0 : vector<8x32xf32>
    %cst_3 = arith.constant dense<0.000000e+00> : vector<8xf32>
    %4 = vector.multi_reduction <add>, %3, %cst_3 [1] : vector<8x32xf32> to vector<8xf32>
    %5 = vector.shape_cast %4 : vector<8xf32> to vector<8x1xf32>
    %cst_4 = arith.constant 1.000000e+00 : f32
    %6 = vector.broadcast %cst_4 : f32 to vector<8x1xf32>
    %7 = arith.mulf %5, %6 : vector<8x1xf32>
    %c0_5 = arith.constant 0 : index
    %c0_6 = arith.constant 0 : index
    %8 = vector.load %arg3[%c0_5, %c0_6] : memref<1x128xf32, #tpu.memory_space<vmem>>, vector<1x128xf32>
    %9 = vector.broadcast %7 : vector<8x1xf32> to vector<8x128xf32>
    %10 = vector.broadcast %8 : vector<1x128xf32> to vector<8x128xf32>
    %11 = arith.addf %9, %10 : vector<8x128xf32>
    %12 = arith.subf %11, %2 : vector<8x128xf32>
    %cst_7 = arith.constant 1.000000e+00 : f32
    %13 = vector.broadcast %cst_7 : f32 to vector<8x128xf32>
    %14 = arith.maximumf %12, %13 : vector<8x128xf32>
    %15 = tpu.reciprocal %14 {approx = true} : vector<8x128xf32> -> vector<8x128xf32>
    %16 = arith.mulf %14, %15 : vector<8x128xf32>
    %cst_8 = arith.constant 2.000000e+00 : f32
    %17 = vector.broadcast %cst_8 : f32 to vector<8x128xf32>
    %18 = arith.subf %17, %16 : vector<8x128xf32>
    %19 = arith.mulf %15, %18 : vector<8x128xf32>
    %cst_9 = arith.constant dense<0.000000e+00> : vector<8xf32>
    %20 = vector.multi_reduction <add>, %19, %cst_9 [1] : vector<8x128xf32> to vector<8xf32>
    %21 = vector.shape_cast %20 : vector<8xf32> to vector<8x1xf32>
    %22 = tpu.reciprocal %21 {approx = true} : vector<8x1xf32> -> vector<8x1xf32>
    %23 = arith.mulf %21, %22 : vector<8x1xf32>
    %cst_10 = arith.constant 2.000000e+00 : f32
    %24 = vector.broadcast %cst_10 : f32 to vector<8x1xf32>
    %25 = arith.subf %24, %23 : vector<8x1xf32>
    %26 = arith.mulf %22, %25 : vector<8x1xf32>
    %27 = vector.broadcast %26 : vector<8x1xf32> to vector<8x128xf32>
    %28 = arith.mulf %19, %27 : vector<8x128xf32>
    %c0_11 = arith.constant 0 : index
    %c0_12 = arith.constant 0 : index
    %29 = vector.load %arg4[%c0_11, %c0_12] : memref<8x128xf32, #tpu.memory_space<vmem>>, vector<8x128xf32>
    tpu.vector_store %arg4[%c0_11, %c0_12], %28 {strides = array<i32>} : memref<8x128xf32, #tpu.memory_space<vmem>>, vector<8x128xf32>,
    return
  }
  func.func @transform_0(%arg0: i32) -> (i32, i32) {
    %c0_i32 = arith.constant 0 : i32
    %c0_i32_0 = arith.constant 0 : i32
    return %arg0, %c0_i32 : i32, i32
  }
  func.func @transform_1(%arg0: i32) -> (i32, i32) {
    %c0_i32 = arith.constant 0 : i32
    %c0_i32_0 = arith.constant 0 : i32
    %c0_i32_1 = arith.constant 0 : i32
    return %c0_i32, %c0_i32_0 : i32, i32
  }
  func.func @transform_2(%arg0: i32) -> (i32, i32) {
    %c0_i32 = arith.constant 0 : i32
    %c0_i32_0 = arith.constant 0 : i32
    %c0_i32_1 = arith.constant 0 : i32
    return %c0_i32, %c0_i32_0 : i32, i32
  }
  func.func @transform_3(%arg0: i32) -> (i32, i32) {
    %c0_i32 = arith.constant 0 : i32
    %c0_i32_0 = arith.constant 0 : i32
    return %arg0, %c0_i32 : i32, i32
  }
}

</mosaic_0001>

<bundles_post_ra>
// kernel: tpu_custom_call.1
= control target key start
LH: loop header
LB: loop body
LE: loop exit
PB: predicated region body
PF: predicated region fallthrough
CT: control target
= control target key end

     0   :  { %8 = vsyncpa [#allocation3], 0  ;;  %s344_s0 = inlined_call_operand.hbm [shape: f32[8,32], index: 0, kind: input, shape index: {}]   ;;  %s345_s1 = inlined_call_operand.hbm [shape: f32[32,128], index: 1, kind: input, shape index: {}]   ;;  %s346_s2 = inlined_call_operand.vmem [shape: f32[1,128], index: 2, kind: input, shape index: {}]   ;;  %s347_s3 = inlined_call_operand.hbm [shape: f32[8,128], index: 3, kind: output, shape index: {}]  }
   0x1   :  { %9 = vsyncpa [#allocation6], 0 }
   0x2   :  { %10 = vsyncpa [#allocation4], 0  ;;  %s270_s12 = smov [#allocation2]   ;;  %s271_s14 = smov [#allocation5]  }
   0x3   :  { %s17_s13 = sshll.u32 %s270_s12, 4  ;;  %s26_s15 = sshll.u32 %s271_s14, 4  ;;  %s18_s13 = int_to_ptr.vmem [resolvable:$true] %s17_s13  ;;  %s298_s15 = int_to_ptr.vmem [resolvable:$true] %s26_s15 }
   0x4   :  { %s198_s18 = scalar_lea.hbm %s344_s0, 128 }
   0x5   :  { %p199_p0 = scmp.ne.s32.totalorder %s344_s0, %s198_s18  ;;  %p202_p1 = scmp.lt.u32.totalorder %s198_s18, %s344_s0 }
   0x7   :  { %p204_p2 = pnand %p202_p1, %p199_p0 }
   0x9   :  { %207 = shalt.err (!%p204_p2)
}
   0xa   :  { %s208_s23 = scalar_lea.vmem %s18_s13, 128  ;;  %p213_p4 = scmp.lt.s32.totalorder %s18_s13, %s18_s13 }
   0xb   :  { %p209_p3 = scmp.ne.s32.totalorder %s18_s13, %s208_s23  ;;  %p214_p5 = scmp.lt.s32.totalorder %s208_s23, %s208_s23 }
   0xd   :  { %p215_p6 = por %p214_p5, %p213_p4 }
   0xf   :  { %p216_p7 = pnand %p215_p6, %p209_p3 }
  0x11   :  { %219 = shalt.err (!%p216_p7)
}
  0x12   :  { %20 = dma.hbm_to_vmem [thread:$0]  %s344_s0, 128, %s18_s13, [#allocation3]  }
  0x13   :  { %s220_s28 = scalar_lea.hbm %s345_s1, 512 }
  0x14   :  { %p221_p8 = scmp.ne.s32.totalorder %s345_s1, %s220_s28  ;;  %p224_p9 = scmp.lt.u32.totalorder %s220_s28, %s345_s1 }
  0x16   :  { %p226_p10 = pnand %p224_p9, %p221_p8 }
  0x18   :  { %229 = shalt.err (!%p226_p10)
}
  0x19   :  { %s230_s6 = scalar_lea.vmem %s298_s15, 512  ;;  %p235_p12 = scmp.lt.s32.totalorder %s298_s15, %s298_s15 }
  0x1a   :  { %p231_p11 = scmp.ne.s32.totalorder %s298_s15, %s230_s6  ;;  %p236_p13 = scmp.lt.s32.totalorder %s230_s6, %s230_s6 }
  0x1c   :  { %p237_p0 = por %p236_p13, %p235_p12 }
  0x1e   :  { %p238_p1 = pnand %p237_p0, %p231_p11 }
  0x20   :  { %241 = shalt.err (!%p238_p1)
}
  0x21   :  { %s272_s0 = smov 128   ;;  %s273_s7 = smov 8  }
  0x22   :  { %32 = dma.hbm_to_vmem [thread:$0]  %s345_s1, 512, %s298_s15, [#allocation6], %s272_s0, %s272_s0, %s273_s7  }
  0x23   :  { %264 = dma.done.wait [#allocation3], 128  }
  0x24   :  { %265 = vsyncadd [#allocation3], 4294967168 }
  0x25   :  { %266 = dma.done.wait [#allocation6], 512  }
  0x26   :  { %267 = vsyncadd [#allocation6], 4294966784  ;;  %v274_v0 = vmov 0.0|0.0   ;;  %vm275_vm0 = vmmov 0   ;;  %v276_v1 = vmov 0.0   ;;  %v42_v2 = vld [vmem:[#allocation5] sm:$0xff] }
  0x27   :  { %180 = vmatprep.subr.bf16.mxu0 %v274_v0  ;;  %177 = vmatprep.mubr.msk.f32.mxu0 %vm275_vm0, %v276_v1  ;;  %v43_v3 = vld [vmem:[#allocation5 + $0x8] sm:$0xff]  ;;  %v44_v4 = vld [vmem:[#allocation5 + $0x10] sm:$0xff]  ;;  %v45_v6 = vld [vmem:[#allocation5 + $0x18] sm:$0xff]  ;;  %vm46_vm1 = vcmask 261120   ;;  %s277_s11 = smov [#allocation7]  }
  0x28   :  { %v181_v5 = vpack.c.bf16 %v43_v3, %v42_v2  ;;  %v41_v7 = vld [vmem:[#allocation2] sm:$0xff]  ;;  %v184_v9 = vpack.c.bf16 %v45_v6, %v44_v4  ;;  %s152_s12 = sshll.u32 %s277_s11, 4  ;;  %s153_s12 = int_to_ptr.vmem [resolvable:$true] %s152_s12 }
  0x29   :  { %v120_v8 = vmul.f32 %v41_v7, %v41_v7  ;;  %v163_v11 = vld [vmem:[%s346_s2] ss:$0 sm:$0xff]  ;;  %s242_s2 = scalar_lea.vmem %s153_s12, 128  ;;  %p247_p3 = scmp.lt.s32.totalorder %s153_s12, %s153_s12 }
  0x2a   :  { %182 = vmatpush3.bf16.msra.mxu0 %v181_v5  ;;  %p243_p2 = scmp.ne.s32.totalorder %s153_s12, %s242_s2  ;;  %p248_p4 = scmp.lt.s32.totalorder %s242_s2, %s242_s2 }
  0x2b   :  { %183 = vmatprep.subr.bf16.mxu0 %v274_v0  ;;  %v121_v10 = vsel %vm46_vm1, %v120_v8, 0.0 }
  0x2c   :  { %122 = vadd.xlane.f32.xlu0 %v121_v10  ;;  %p249_p5 = por %p248_p4, %p247_p3 }
  0x2e   :  { %185 = vmatpush3.bf16.msra.mxu0 %v184_v9  ;;  %p250_p6 = pnand %p249_p5, %p243_p2 }
  0x31   :  { %178 = vmatmul.mubr.msk.f32.vlgmr.msra.gmra.mrb[0].mxu0 %vm46_vm1, %v41_v7 }
  0xb9   :  { %v123_v12 = vpop.xlane.xlu0 %122 }
  0xba   :  { %v131_v13 = vadd.f32 %v163_v11, %v123_v12 }
 0x104   :  { %v116_v14 = vpop.f32.mrb[0].mxu0 }
 0x105   :  { %v132_v15 = vsub.f32 %v131_v13, %v116_v14  ;;  %v179_v16 = vpop.f32.mrb[1].mxu0 }
 0x107   :  { %v133_v17 = vmax.f32 %v132_v15, 1.0 }
 0x109   :  { %194 = vrcp.f32 %v133_v17 }
 0x113   :  { %v195_v18 = vpop.eup %194 }
 0x114   :  { %v135_v19 = vmul.f32 %v195_v18, %v133_v17 }
 0x116   :  { %v136_v20 = vsub.f32 2.0, %v135_v19 }
 0x118   :  { %v137_v21 = vmul.f32 %v195_v18, %v136_v20 }
 0x11a   :  { %138 = vadd.xlane.f32.xlu0 %v137_v21 }
 0x1a7   :  { %v139_v22 = vpop.xlane.xlu0 %138 }
 0x1a8   :  { %196 = vrcp.f32 %v139_v22 }
 0x1b2   :  { %v197_v23 = vpop.eup %196 }
 0x1b3   :  { %v141_v24 = vmul.f32 %v197_v23, %v139_v22 }
 0x1b5   :  { %v142_v25 = vsub.f32 2.0, %v141_v24 }
 0x1b7   :  { %v143_v26 = vmul.f32 %v197_v23, %v142_v25 }
 0x1b9   :  { %v144_v27 = vmul.f32 %v143_v26, %v137_v21 }
 0x1bb   :  { %145 = vst [vmem:[#allocation7] sm:$0xff] %v144_v27 }
 0x1bc   :  { %253 = shalt.err (!%p250_p6)
}
 0x1bd   :  { %s254_s15 = scalar_lea.hbm %s347_s3, 128 }
 0x1be   :  { %p255_p7 = scmp.ne.s32.totalorder %s347_s3, %s254_s15  ;;  %p258_p8 = scmp.lt.u32.totalorder %s254_s15, %s347_s3 }
 0x1c0   :  { %p260_p9 = pnand %p258_p8, %p255_p7 }
 0x1c2   :  { %263 = shalt.err (!%p260_p9)
}
 0x1c3   :  { %155 = dma.vmem_to_hbm [thread:$0]  %s153_s12, 128, %s347_s3, [#allocation4]  }
 0x1c4   :  { %268 = dma.done.wait [#allocation4], 128  }
 0x1c5   :  { %269 = vsyncadd [#allocation4], 4294967168 }
 0x1c6   :  { %159 = vsyncpa [#allocation3], 1 }
 0x1c7   :  { %160 = vsyncpa [#allocation6], 1 }
 0x1c8   :  { %161 = vsyncpa [#allocation4], 1 }

// kernel: tpu_custom_call.1
= control target key start
LH: loop header
LB: loop body
LE: loop exit
PB: predicated region body
PF: predicated region fallthrough
CT: control target
= control target key end

     0   :  { %8 = vsyncpa [#allocation3], 0  ;;  %s344_s0 = inlined_call_operand.hbm [shape: f32[8,32], index: 0, kind: input, shape index: {}]   ;;  %s345_s1 = inlined_call_operand.hbm [shape: f32[32,128], index: 1, kind: input, shape index: {}]   ;;  %s346_s2 = inlined_call_operand.vmem [shape: f32[1,128], index: 2, kind: input, shape index: {}]   ;;  %s347_s3 = inlined_call_operand.hbm [shape: f32[8,128], index: 3, kind: output, shape index: {}]  }
   0x1   :  { %9 = vsyncpa [#allocation6], 0 }
   0x2   :  { %10 = vsyncpa [#allocation4], 0  ;;  %s270_s12 = smov [#allocation2]   ;;  %s271_s14 = smov [#allocation5]  }
   0x3   :  { %s17_s13 = sshll.u32 %s270_s12, 4  ;;  %s26_s15 = sshll.u32 %s271_s14, 4  ;;  %s18_s13 = int_to_ptr.vmem [resolvable:$true] %s17_s13  ;;  %s298_s15 = int_to_ptr.vmem [resolvable:$true] %s26_s15 }
   0x4   :  { %s198_s18 = scalar_lea.hbm %s344_s0, 128 }
   0x5   :  { %p199_p0 = scmp.ne.s32.totalorder %s344_s0, %s198_s18  ;;  %p202_p1 = scmp.lt.u32.totalorder %s198_s18, %s344_s0 }
   0x7   :  { %p204_p2 = pnand %p202_p1, %p199_p0 }
   0x9   :  { %207 = shalt.err (!%p204_p2)
}
   0xa   :  { %s208_s23 = scalar_lea.vmem %s18_s13, 128  ;;  %p213_p4 = scmp.lt.s32.totalorder %s18_s13, %s18_s13 }
   0xb   :  { %p209_p3 = scmp.ne.s32.totalorder %s18_s13, %s208_s23  ;;  %p214_p5 = scmp.lt.s32.totalorder %s208_s23, %s208_s23 }
   0xd   :  { %p215_p6 = por %p214_p5, %p213_p4 }
   0xf   :  { %p216_p7 = pnand %p215_p6, %p209_p3 }
  0x11   :  { %219 = shalt.err (!%p216_p7)
}
  0x12   :  { %20 = dma.hbm_to_vmem [thread:$0]  %s344_s0, 128, %s18_s13, [#allocation3]  }
  0x13   :  { %s220_s28 = scalar_lea.hbm %s345_s1, 512 }
  0x14   :  { %p221_p8 = scmp.ne.s32.totalorder %s345_s1, %s220_s28  ;;  %p224_p9 = scmp.lt.u32.totalorder %s220_s28, %s345_s1 }
  0x16   :  { %p226_p10 = pnand %p224_p9, %p221_p8 }
  0x18   :  { %229 = shalt.err (!%p226_p10)
}
  0x19   :  { %s230_s6 = scalar_lea.vmem %s298_s15, 512  ;;  %p235_p12 = scmp.lt.s32.totalorder %s298_s15, %s298_s15 }
  0x1a   :  { %p231_p11 = scmp.ne.s32.totalorder %s298_s15, %s230_s6  ;;  %p236_p13 = scmp.lt.s32.totalorder %s230_s6, %s230_s6 }
  0x1c   :  { %p237_p0 = por %p236_p13, %p235_p12 }
  0x1e   :  { %p238_p1 = pnand %p237_p0, %p231_p11 }
  0x20   :  { %241 = shalt.err (!%p238_p1)
}
  0x21   :  { %s272_s0 = smov 128   ;;  %s273_s7 = smov 8  }
  0x22   :  { %32 = dma.hbm_to_vmem [thread:$0]  %s345_s1, 512, %s298_s15, [#allocation6], %s272_s0, %s272_s0, %s273_s7  }
  0x23   :  { %264 = dma.done.wait [#allocation3], 128  }
  0x24   :  { %265 = vsyncadd [#allocation3], 4294967168 }
  0x25   :  { %266 = dma.done.wait [#allocation6], 512  }
  0x26   :  { %267 = vsyncadd [#allocation6], 4294966784  ;;  %v274_v0 = vmov 0.0|0.0   ;;  %vm275_vm0 = vmmov 0   ;;  %v276_v1 = vmov 0.0   ;;  %v42_v2 = vld [vmem:[#allocation5] sm:$0xff] }
  0x27   :  { %180 = vmatprep.subr.bf16.mxu0 %v274_v0  ;;  %177 = vmatprep.mubr.msk.f32.mxu0 %vm275_vm0, %v276_v1  ;;  %v43_v3 = vld [vmem:[#allocation5 + $0x8] sm:$0xff]  ;;  %v44_v4 = vld [vmem:[#allocation5 + $0x10] sm:$0xff]  ;;  %v45_v6 = vld [vmem:[#allocation5 + $0x18] sm:$0xff]  ;;  %vm46_vm1 = vcmask 261120   ;;  %s277_s11 = smov [#allocation7]  }
  0x28   :  { %v181_v5 = vpack.c.bf16 %v43_v3, %v42_v2  ;;  %v41_v7 = vld [vmem:[#allocation2] sm:$0xff]  ;;  %v184_v9 = vpack.c.bf16 %v45_v6, %v44_v4  ;;  %s152_s12 = sshll.u32 %s277_s11, 4  ;;  %s153_s12 = int_to_ptr.vmem [resolvable:$true] %s152_s12 }
  0x29   :  { %v120_v8 = vmul.f32 %v41_v7, %v41_v7  ;;  %v163_v11 = vld [vmem:[%s346_s2] ss:$0 sm:$0xff]  ;;  %s242_s2 = scalar_lea.vmem %s153_s12, 128  ;;  %p247_p3 = scmp.lt.s32.totalorder %s153_s12, %s153_s12 }
  0x2a   :  { %182 = vmatpush3.bf16.msra.mxu0 %v181_v5  ;;  %p243_p2 = scmp.ne.s32.totalorder %s153_s12, %s242_s2  ;;  %p248_p4 = scmp.lt.s32.totalorder %s242_s2, %s242_s2 }
  0x2b   :  { %183 = vmatprep.subr.bf16.mxu0 %v274_v0  ;;  %v121_v10 = vsel %vm46_vm1, %v120_v8, 0.0 }
  0x2c   :  { %122 = vadd.xlane.f32.xlu0 %v121_v10  ;;  %p249_p5 = por %p248_p4, %p247_p3 }
  0x2e   :  { %185 = vmatpush3.bf16.msra.mxu0 %v184_v9  ;;  %p250_p6 = pnand %p249_p5, %p243_p2 }
  0x31   :  { %178 = vmatmul.mubr.msk.f32.vlgmr.msra.gmra.mrb[0].mxu0 %vm46_vm1, %v41_v7 }
  0xb9   :  { %v123_v12 = vpop.xlane.xlu0 %122 }
  0xba   :  { %v131_v13 = vadd.f32 %v163_v11, %v123_v12 }
 0x104   :  { %v116_v14 = vpop.f32.mrb[0].mxu0 }
 0x105   :  { %v132_v15 = vsub.f32 %v131_v13, %v116_v14  ;;  %v179_v16 = vpop.f32.mrb[1].mxu0 }
 0x107   :  { %v133_v17 = vmax.f32 %v132_v15, 1.0 }
 0x109   :  { %194 = vrcp.f32 %v133_v17 }
 0x113   :  { %v195_v18 = vpop.eup %194 }
 0x114   :  { %v135_v19 = vmul.f32 %v195_v18, %v133_v17 }
 0x116   :  { %v136_v20 = vsub.f32 2.0, %v135_v19 }
 0x118   :  { %v137_v21 = vmul.f32 %v195_v18, %v136_v20 }
 0x11a   :  { %138 = vadd.xlane.f32.xlu0 %v137_v21 }
 0x1a7   :  { %v139_v22 = vpop.xlane.xlu0 %138 }
 0x1a8   :  { %196 = vrcp.f32 %v139_v22 }
 0x1b2   :  { %v197_v23 = vpop.eup %196 }
 0x1b3   :  { %v141_v24 = vmul.f32 %v197_v23, %v139_v22 }
 0x1b5   :  { %v142_v25 = vsub.f32 2.0, %v141_v24 }
 0x1b7   :  { %v143_v26 = vmul.f32 %v197_v23, %v142_v25 }
 0x1b9   :  { %v144_v27 = vmul.f32 %v143_v26, %v137_v21 }
 0x1bb   :  { %145 = vst [vmem:[#allocation7] sm:$0xff] %v144_v27 }
 0x1bc   :  { %253 = shalt.err (!%p250_p6)
}
 0x1bd   :  { %s254_s15 = scalar_lea.hbm %s347_s3, 128 }
 0x1be   :  { %p255_p7 = scmp.ne.s32.totalorder %s347_s3, %s254_s15  ;;  %p258_p8 = scmp.lt.u32.totalorder %s254_s15, %s347_s3 }
 0x1c0   :  { %p260_p9 = pnand %p258_p8, %p255_p7 }
 0x1c2   :  { %263 = shalt.err (!%p260_p9)
}
 0x1c3   :  { %155 = dma.vmem_to_hbm [thread:$0]  %s153_s12, 128, %s347_s3, [#allocation4]  }
 0x1c4   :  { %268 = dma.done.wait [#allocation4], 128  }
 0x1c5   :  { %269 = vsyncadd [#allocation4], 4294967168 }
 0x1c6   :  { %159 = vsyncpa [#allocation3], 1 }
 0x1c7   :  { %160 = vsyncpa [#allocation6], 1 }
 0x1c8   :  { %161 = vsyncpa [#allocation4], 1 }

</bundles_post_ra>
